<compile_context>
chip_gen: v7x
topology: tpu7x:2x2x1
jax: 0.10.0
libtpu: 0.0.40
codegen_flags: <defaults>
</compile_context>

<pallas_src>
import jax
import jax.numpy as jnp
from jax.experimental import pallas as pl
from jax.experimental.pallas import tpu as pltpu


def hash_layer_kernel(x_ref, w_ref, b_ref, o_ref):
    # x_ref: (tile_b, H) feature dtype (f32)   w_ref: (H, hash_bit) bf16/f32
    # b_ref: (1, hash_bit) f32                 o_ref: (tile_b, hash_bit) out dtype
    x = x_ref[...].astype(w_ref.dtype)          # in-kernel cast; hides under DMA
    acc = jnp.dot(x, w_ref[...], preferred_element_type=jnp.float32)
    o_ref[...] = jnp.tanh(acc + b_ref[...]).astype(o_ref.dtype)


def prepare_hash_params(weight, bias, *, param_dtype=jnp.bfloat16):
    """One-time parameter prep (call at model-load time, NOT per forward call).

    weight: (hash_bit, hidden) -- PyTorch Linear convention.
    bias:   (hash_bit,)
    Returns weight transposed to (hidden, hash_bit) in `param_dtype` and bias
    as (1, hash_bit) f32.  Pass param_dtype=jnp.float32 if a downstream
    sign-binarisation cannot tolerate bf16 rounding of near-zero pre-tanh
    values (the kernel then runs a full-f32 matmul).
    """
    hb, h = weight.shape
    w_t = jnp.asarray(weight).T.astype(param_dtype)            # (H, hash_bit)
    b = jnp.asarray(bias).astype(jnp.float32).reshape(1, hb)   # f32 bias-add
    return w_t, b


def _vmem_limit_bytes():
    """Generation-aware VMEM limit: ~48 MiB on v7x (64 MiB/TC), 96 MiB on v5e/v6e."""
    try:
        cap = int(pltpu.get_tpu_info().vmem_capacity_bytes)
    except Exception:  # pragma: no cover - conservative fallback (v7x-sized)
        cap = 64 * 1024 * 1024
    return int(min(cap * 3 // 4, 96 * 1024 * 1024))


def _choose_tile_b(n_rows, h, hb, *, x_bytes, o_bytes, budget):
    """Batch-tile rows per grid step."""
    if n_rows < 16:
        return n_rows                               # one full-extent block
    per_row = 2 * h * x_bytes + 2 * hb * o_bytes    # double-buffered in + out tile
    vmem_cap = max(16, (max(budget, per_row * 16) // per_row) // 16 * 16)
    # >=2 programs so v7x's second TensorCore gets work; >=4 once 512-row
    # tiles still amortize the ~0.35us/step overhead.  512-2048-row tiles hit
    # ~85% of the HBM roofline; one monolithic tile exposes DMA serially.
    min_progs = 4 if n_rows >= 4 * 512 else 2
    prog_cap = (n_rows + min_progs - 1) // min_progs
    prog_cap = max(8, (prog_cap + 7) // 8 * 8)      # sublane aligned
    tile = max(8, min(vmem_cap, 2048, prog_cap))
    if tile >= 32:
        tile = (tile // 16) * 16                    # bf16 sublane packing (16 rows/vreg)
    return tile


def hash_layer(feature, w_t, b_row, *, tile_b=None, out_dtype=None):
    """tanh(feature @ W.T + b).  feature: (..., hidden) -> (..., hash_bit).

    w_t, b_row come from prepare_hash_params.  out_dtype=jnp.bfloat16 halves
    the (dominant) output HBM writeback while keeping f32 accumulation/tanh.
    """
    *lead, h = feature.shape
    assert w_t.shape[0] == h, "hidden size mismatch with prepared weight"
    hb = w_t.shape[1]
    out_dtype = feature.dtype if out_dtype is None else out_dtype

    x = feature.reshape(-1, h)          # no cast, no pad: kernel reads HBM dtype directly
    n_rows = x.shape[0]

    vmem_limit = _vmem_limit_bytes()
    w_bytes = h * hb * w_t.dtype.itemsize
    # Single-buffer the resident weight only when the saved VMEM matters
    # (>= 1 MiB per buffer, i.e. large hidden sizes); negligible otherwise and
    # the default double-buffered lowering is the most portable.
    single_buffer_w = w_bytes >= (1 << 20)
    fixed_bytes = (1 if single_buffer_w else 2) * w_bytes \
        + 2 * hb * b_row.dtype.itemsize

    if tile_b is None:
        tile_b = _choose_tile_b(
            n_rows, h, hb,
            x_bytes=x.dtype.itemsize,
            o_bytes=jnp.dtype(out_dtype).itemsize,
            budget=vmem_limit - fixed_bytes - (2 << 20))
    tile_b = int(tile_b)
    if tile_b >= n_rows:
        tile_b = n_rows                              # single full-extent block
    else:
        tile_b = max(8, (tile_b // 8) * 8)           # (8,128) tiling rule

    grid = (pl.cdiv(n_rows, tile_b),)                # partial last block: Pallas masks it

    cost = pl.CostEstimate(
        flops=2 * n_rows * h * hb,
        transcendentals=n_rows * hb,
        bytes_accessed=(n_rows * h * x.dtype.itemsize           # activations in
                        + h * hb * w_t.dtype.itemsize           # weight (fetched once)
                        + hb * b_row.dtype.itemsize             # bias
                        + n_rows * hb * jnp.dtype(out_dtype).itemsize))  # out

    if single_buffer_w:
        w_spec = pl.BlockSpec((h, hb), lambda i: (0, 0),
                              pipeline_mode=pl.Buffered(1))
    else:
        w_spec = pl.BlockSpec((h, hb), lambda i: (0, 0))

    out = pl.pallas_call(
        hash_layer_kernel,
        out_shape=jax.ShapeDtypeStruct((n_rows, hb), out_dtype),
        grid_spec=pltpu.PrefetchScalarGridSpec(
            num_scalar_prefetch=0,
            grid=grid,
            in_specs=[
                pl.BlockSpec((tile_b, h), lambda i: (i, 0)),   # activation tile
                w_spec,                                        # weight (resident)
                pl.BlockSpec((1, hb), lambda i: (0, 0)),       # bias   (resident)
            ],
            out_specs=pl.BlockSpec((tile_b, hb), lambda i: (i, 0)),
        ),
        compiler_params=pltpu.CompilerParams(
            dimension_semantics=("parallel",),
            vmem_limit_bytes=vmem_limit,
        ),
        cost_estimate=cost,
    )(x, w_t, b_row)

    return out.reshape(*lead, hb)


if __name__ == "__main__":
    # config.hidden_size = 32, hash_bit = 16, batch = 8 (toy shipped config).
    B, H, HASH_BIT = 8, 32, 16

    key = jax.random.PRNGKey(0)
    kx, kw, kb = jax.random.split(key, 3)
    feature = jax.random.normal(kx, (B, H), dtype=jnp.float32)
    # PyTorch Linear shapes: weight (hash_bit, H), bias (hash_bit,)
    weight = jax.random.normal(kw, (HASH_BIT, H), dtype=jnp.float32) * 0.1
    bias = jax.random.normal(kb, (HASH_BIT,), dtype=jnp.float32) * 0.1

    w_t, b_row = prepare_hash_params(weight, bias)        # one-time param prep

    # 1) Default path: f32 output (module semantics), tiny batch -> one block.
    out = jax.block_until_ready(hash_layer(feature, w_t, b_row))
    ref = jnp.tanh(feature @ weight.T + bias)
    assert out.shape == (B, HASH_BIT)
    assert out.dtype == feature.dtype
    assert jnp.allclose(out, ref, atol=1e-2, rtol=1e-2), \
        float(jnp.max(jnp.abs(out - ref)))

    # 2) Ragged multi-step grid (partial trailing block, no pre-pad copy) with
    #    the halved bf16 output writeback.
    B2 = 200
    feat2 = jax.random.normal(jax.random.PRNGKey(1), (B2, H), dtype=jnp.float32)
    out2 = jax.block_until_ready(
        hash_layer(feat2, w_t, b_row, tile_b=64, out_dtype=jnp.bfloat16))
    ref2 = jnp.tanh(feat2 @ weight.T + bias)
    assert out2.shape == (B2, HASH_BIT)
    assert out2.dtype == jnp.bfloat16
    assert jnp.allclose(out2.astype(jnp.float32), ref2, atol=2e-2, rtol=2e-2)

    # 3) 3-D leading dims + tiny non-multiple-of-8 batch (full-extent block).
    feat3 = jax.random.normal(jax.random.PRNGKey(2), (2, 5, H), dtype=jnp.float32)
    out3 = jax.block_until_ready(hash_layer(feat3, w_t, b_row))
    ref3 = jnp.tanh(feat3 @ weight.T + bias)
    assert out3.shape == (2, 5, HASH_BIT)
    assert jnp.allclose(out3, ref3, atol=1e-2, rtol=1e-2)

    print("KERNEL_OK")
</pallas_src>

<mosaic_0001>
module attributes {stable_mosaic.version = 11 : i64} {
  func.func @hash_layer_kernel(%arg0: i32, %arg1: memref<8x32xf32, #tpu.memory_space<vmem>>, %arg2: memref<32x16xbf16, #tpu.memory_space<vmem>>, %arg3: memref<1x16xf32, #tpu.memory_space<vmem>>, %arg4: memref<8x16xf32, #tpu.memory_space<vmem>>) attributes {dimension_semantics = [#tpu.dimension_semantics<parallel>], iteration_bounds = array<i64: 1>, scalar_prefetch = 0 : i64, scratch_operands = 0 : i64, tpu.core_type = #tpu.core_type<tc>, window_params = [{transform_indices = @transform_0, window_bounds = array<i64: 8, 32>}, {pipeline_mode = #tpu.pipeline_mode<synchronous>, transform_indices = @transform_1, window_bounds = array<i64: 32, 16>}, {pipeline_mode = #tpu.pipeline_mode<synchronous>, transform_indices = @transform_2, window_bounds = array<i64: 1, 16>}, {transform_indices = @transform_3, window_bounds = array<i64: 8, 16>}]} {
    %c0 = arith.constant 0 : index
    %c0_0 = arith.constant 0 : index
    %0 = vector.load %arg1[%c0, %c0_0] : memref<8x32xf32, #tpu.memory_space<vmem>>, vector<8x32xf32>
    %1 = arith.truncf %0 : vector<8x32xf32> to vector<8x32xbf16>
    %c0_1 = arith.constant 0 : index
    %c0_2 = arith.constant 0 : index
    %2 = vector.load %arg2[%c0_1, %c0_2] : memref<32x16xbf16, #tpu.memory_space<vmem>>, vector<32x16xbf16>
    %cst = arith.constant dense<0.000000e+00> : vector<8x16xf32>
    %3 = tpu.matmul %1, %2, %cst {dimension_numbers = #tpu.dot_dimension_numbers<[1], [0], [0], [1], [0, 0, 1, 1], [], []>} : vector<8x32xbf16>, vector<32x16xbf16>, vector<8x16xf32> -> vector<8x16xf32>
    %c0_3 = arith.constant 0 : index
    %c0_4 = arith.constant 0 : index
    %4 = vector.load %arg3[%c0_3, %c0_4] : memref<1x16xf32, #tpu.memory_space<vmem>>, vector<1x16xf32>
    %5 = vector.broadcast %4 : vector<1x16xf32> to vector<8x16xf32>
    %6 = arith.addf %3, %5 : vector<8x16xf32>
    %7 = math.tanh %6 : vector<8x16xf32>
    %c0_5 = arith.constant 0 : index
    %c0_6 = arith.constant 0 : index
    %8 = vector.load %arg4[%c0_5, %c0_6] : memref<8x16xf32, #tpu.memory_space<vmem>>, vector<8x16xf32>
    tpu.vector_store %arg4[%c0_5, %c0_6], %7 {strides = array<i32>} : memref<8x16xf32, #tpu.memory_space<vmem>>, vector<8x16xf32>,
    return
  }
  func.func @transform_0(%arg0: i32) -> (i32, i32) {
    %c0_i32 = arith.constant 0 : i32
    %c0_i32_0 = arith.constant 0 : i32
    return %arg0, %c0_i32 : i32, i32
  }
  func.func @transform_1(%arg0: i32) -> (i32, i32) {
    %c0_i32 = arith.constant 0 : i32
    %c0_i32_0 = arith.constant 0 : i32
    %c0_i32_1 = arith.constant 0 : i32
    return %c0_i32, %c0_i32_0 : i32, i32
  }
  func.func @transform_2(%arg0: i32) -> (i32, i32) {
    %c0_i32 = arith.constant 0 : i32
    %c0_i32_0 = arith.constant 0 : i32
    %c0_i32_1 = arith.constant 0 : i32
    return %c0_i32, %c0_i32_0 : i32, i32
  }
  func.func @transform_3(%arg0: i32) -> (i32, i32) {
    %c0_i32 = arith.constant 0 : i32
    %c0_i32_0 = arith.constant 0 : i32
    return %arg0, %c0_i32 : i32, i32
  }
}

</mosaic_0001>

<bundles_post_ra>
// kernel: tpu_custom_call.1
= control target key start
LH: loop header
LB: loop body
LE: loop exit
PB: predicated region body
PF: predicated region fallthrough
CT: control target
= control target key end

     0   :  { %v148_v1 = vmov 0.0   ;;  %vm149_vm0 = vmmov 0   ;;  %s195_s0 = inlined_call_operand.vmem [shape: f32[8,32], index: 0, kind: input, shape index: {}]   ;;  %s196_s1 = inlined_call_operand.vmem [shape: bf16[32,16], index: 1, kind: input, shape index: {}]   ;;  %s197_s2 = inlined_call_operand.vmem [shape: f32[1,16], index: 2, kind: input, shape index: {}]   ;;  %s198_s3 = inlined_call_operand.hbm [shape: f32[8,16], index: 3, kind: output, shape index: {}]  }
   0x1   :  { %v120_v0 = vld [vmem:[%s196_s1] sm:$0xff]   ;;  %109 = vmatprep.subr.bf16.mxu0 %v148_v1  ;;  %v121_v2 = vld [vmem:[%s196_s1 + $0x8] sm:$0xff]   ;;  %113 = vmatprep.mubr.msk.bf16.mxu0 %vm149_vm0, %v148_v1 }
   0x2   :  { %110 = vmatpush3.bf16.msra.mxu0 %v120_v0  ;;  %v16_v3 = vld [vmem:[%s195_s0] sm:$0xff] }
   0x3   :  { %8 = vsyncpa [#allocation3], 0  ;;  %111 = vmatprep.subr.bf16.mxu0 %v148_v1  ;;  %v17_v4 = vpack.c.bf16 %v16_v3, %v16_v3  ;;  %vm41_vm1 = vcmask 261120   ;;  %v102_v5 = vld [vmem:[%s197_s2] ss:$0 sm:$0xff]  ;;  %s150_s1 = smov [#allocation2]  }
   0x4   :  { %s94_s20 = sshll.u32 %s150_s1, 4  ;;  %vm86_vm2 = vcmask 130048   ;;  %s95_s20 = int_to_ptr.vmem [resolvable:$true] %s94_s20 }
   0x5   :  { %s124_s0 = scalar_lea.vmem %s95_s20, 128  ;;  %p129_p1 = scmp.lt.s32.totalorder %s95_s20, %s95_s20 }
   0x6   :  { %112 = vmatpush3.bf16.msra.mxu0 %v121_v2  ;;  %p125_p0 = scmp.ne.s32.totalorder %s95_s20, %s124_s0  ;;  %p130_p2 = scmp.lt.s32.totalorder %s124_s0, %s124_s0 }
   0x8   :  { %p131_p3 = por %p130_p2, %p129_p1 }
   0x9   :  { %114 = vmatmul.mubr.msk.bf16.vlgmr.msra.gmra.mrb[0].mxu0 %vm41_vm1, %v17_v4 }
   0xa   :  { %p132_p4 = pnand %p131_p3, %p125_p0 }
  0xdc   :  { %v79_v6 = vpop.f32.mrb[0].mxu0 }
  0xdd   :  { %v80_v7 = vadd.f32 %v102_v5, %v79_v6  ;;  %v115_v8 = vpop.f32.mrb[1].mxu0 }
  0xde   :  { %v82_v9 = vpop.f32.mrb[2].mxu0 }
  0xdf   :  { %122 = vtanh.f32 %v80_v7  ;;  %v116_v10 = vpop.f32.mrb[3].mxu0 }
  0xe9   :  { %v123_v11 = vpop.eup %122 }
  0xea   :  { %87 = vst.msk [vmem:[#allocation2] sm:$0xff] %vm86_vm2, %v123_v11 }
  0xeb   :  { %135 = shalt.err (!%p132_p4)
}
  0xec   :  { %s136_s22 = scalar_lea.hbm %s198_s3, 128 }
  0xed   :  { %p137_p5 = scmp.ne.s32.totalorder %s198_s3, %s136_s22  ;;  %p140_p6 = scmp.lt.u32.totalorder %s136_s22, %s198_s3 }
  0xef   :  { %p142_p7 = pnand %p140_p6, %p137_p5 }
  0xf1   :  { %145 = shalt.err (!%p142_p7)
}
  0xf2   :  { %97 = dma.vmem_to_hbm [thread:$0]  %s95_s20, 128, %s198_s3, [#allocation3]  }
  0xf3   :  { %146 = dma.done.wait [#allocation3], 128  }
  0xf4   :  { %147 = vsyncadd [#allocation3], 4294967168 }
  0xf5   :  { %101 = vsyncpa [#allocation3], 1 }

</bundles_post_ra>
